<compile_context>
chip_gen: v6e
topology: v6e:2x2x1
jax: 0.10.0
libtpu: 0.0.40
codegen_flags: <defaults>
</compile_context>

<pallas_src>
import jax
import jax.numpy as jnp
from jax import lax
from jax.experimental import pallas as pl
from jax.experimental.pallas import tpu as pltpu


_MAX_BLOCK_BYTES = 4 * 1024 * 1024     # ~4 MiB per x/out block
_VMEM_LIMIT_BYTES = 48 * 1024 * 1024   # safe on v5e/v6e (128 MiB) and v7x (64 MiB/TC)


def _frozen_bn_kernel(x_ref, scale_ref, bias_ref, o_ref):
    # One mul + one add per element on the VPU. scale/bias broadcast from a
    # (row_tile, 1) or (1, lane_tile) f32 block; result cast back to x dtype.
    o_ref[...] = (x_ref[...] * scale_ref[...] + bias_ref[...]).astype(o_ref.dtype)


def _largest_divisor(n, multiple, max_val):
    """Largest divisor of n that is a multiple of `multiple` and <= max_val, else None."""
    best = None
    d = multiple
    limit = min(n, max_val)
    while d <= limit:
        if n % d == 0:
            best = d
        d += multiple
    return best


def _pick_tiles(rows, lanes, itemsize, max_block_bytes=_MAX_BLOCK_BYTES):
    """Choose (row_tile, lane_tile) obeying the (sublane, 128) BlockSpec rule.

    The block-byte budget (not a lane cap) governs the tile choice. Sublane
    multiple is dtype-dependent so packed dtypes keep fully-populated vregs.
    """
    sub_mult = max(8, 32 // itemsize)             # f32 -> 8, bf16 -> 16, int8/fp8 -> 32
    min_rows = sub_mult if rows % sub_mult == 0 else rows

    lane_budget = max(128, max_block_bytes // max(1, min_rows * itemsize))
    lane_tile = _largest_divisor(lanes, 128, min(lanes, lane_budget))
    if lane_tile is None:
        # Ragged lane dim (no multiple-of-128 divisor): full extent is always legal.
        lane_tile = lanes

    if rows % sub_mult == 0:
        row_budget = max(sub_mult, max_block_bytes // max(1, lane_tile * itemsize))
        row_tile = _largest_divisor(rows, sub_mult, min(rows, row_budget))
        if row_tile is None:
            row_tile = rows
    else:
        row_tile = rows                           # full extent (always legal)
    return row_tile, lane_tile


def frozen_batchnorm2d(x, weight, bias, running_mean, running_var, *,
                       donate_input=False):
    """x: (N, C, H, W). Returns (N, C, H, W) with FrozenBatchNorm2d semantics.

    If donate_input=True the output aliases the input buffer (caller must
    donate x), avoiding a second full-size HBM activation allocation.
    """
    N, C, H, W = x.shape
    HW = H * W
    eps = 1e-5

    # Per-channel affine precompute (tiny, C elements, plain JAX, f32).
    w32 = weight.astype(jnp.float32)
    b32 = bias.astype(jnp.float32)
    rm32 = running_mean.astype(jnp.float32)
    rv32 = running_var.astype(jnp.float32)
    scale_c = w32 * lax.rsqrt(rv32 + eps)          # (C,)
    bias_c = b32 - rm32 * scale_c                  # (C,)

    itemsize = jnp.dtype(x.dtype).itemsize

    if HW % 128 == 0 or (C * HW) % 128 != 0:
        # --- Row-param layout: x viewed as (N*C, HW); params are per-row. ---
        # (Also the ragged fallback when neither HW nor C*HW is a multiple of 128.)
        rows, lanes = N * C, HW
        x2 = x.reshape(rows, lanes)                # free, contiguous reshape
        scale2 = jnp.broadcast_to(scale_c[None, :, None], (N, C, 1)).reshape(rows, 1)
        bias2 = jnp.broadcast_to(bias_c[None, :, None], (N, C, 1)).reshape(rows, 1)
        row_tile, lane_tile = _pick_tiles(rows, lanes, itemsize)
        param_spec = pl.BlockSpec((row_tile, 1), lambda r, h: (r, 0))
        param_bytes = 2 * rows * 4
    else:
        # --- Lane-param layout for small/ragged HW (e.g. 49, 196, 784): ---
        # x viewed as (N, C*HW); params pre-expanded per element along lanes so
        # blocks stay lane-dense multiples of 128 (unmasked stores, >=1 MiB blocks).
        rows, lanes = N, C * HW
        x2 = x.reshape(rows, lanes)
        scale2 = jnp.broadcast_to(scale_c[:, None], (C, HW)).reshape(1, lanes)
        bias2 = jnp.broadcast_to(bias_c[:, None], (C, HW)).reshape(1, lanes)
        row_tile, lane_tile = _pick_tiles(rows, lanes, itemsize)
        param_spec = pl.BlockSpec((1, lane_tile), lambda r, h: (0, h))
        param_bytes = 2 * lanes * 4

    grid = (rows // row_tile, lanes // lane_tile)
    x_spec = pl.BlockSpec((row_tile, lane_tile), lambda r, h: (r, h))

    total = N * C * HW
    cost = pl.CostEstimate(
        flops=2 * total,
        transcendentals=0,
        bytes_accessed=2 * total * itemsize + param_bytes,
    )

    out2 = pl.pallas_call(
        _frozen_bn_kernel,
        out_shape=jax.ShapeDtypeStruct((rows, lanes), x.dtype),
        grid=grid,
        in_specs=[x_spec, param_spec, param_spec],
        out_specs=x_spec,
        compiler_params=pltpu.CompilerParams(
            dimension_semantics=("parallel", "parallel"),
            vmem_limit_bytes=_VMEM_LIMIT_BYTES),
        cost_estimate=cost,
        input_output_aliases={0: 0} if donate_input else {},
    )(x2, scale2, bias2)

    return out2.reshape(N, C, H, W)


def _reference(x, weight, bias, running_mean, running_var):
    eps = 1e-5
    C = x.shape[1]
    w_ = weight.reshape(1, C, 1, 1)
    b_ = bias.reshape(1, C, 1, 1)
    rv_ = running_var.reshape(1, C, 1, 1)
    rm_ = running_mean.reshape(1, C, 1, 1)
    scale = w_ * lax.rsqrt(rv_ + eps)
    bias_f = b_ - rm_ * scale
    return x * scale + bias_f


def _run_case(key, N, C, H, W):
    kx, kw, kb, km, kv = jax.random.split(key, 5)
    x = jax.random.normal(kx, (N, C, H, W), dtype=jnp.float32)
    weight = jnp.ones((C,), jnp.float32) + 0.1 * jax.random.normal(kw, (C,))
    bias = jnp.zeros((C,), jnp.float32) + 0.1 * jax.random.normal(kb, (C,))
    running_mean = 0.1 * jax.random.normal(km, (C,))
    running_var = jnp.ones((C,), jnp.float32) + 0.1 * jnp.abs(
        jax.random.normal(kv, (C,)))

    out = frozen_batchnorm2d(x, weight, bias, running_mean, running_var)
    out = jax.block_until_ready(out)
    ref = _reference(x, weight, bias, running_mean, running_var)

    assert out.shape == (N, C, H, W)
    assert jnp.allclose(out, ref, atol=1e-5, rtol=1e-5)


if __name__ == "__main__":
    key = jax.random.PRNGKey(0)
    k1, k2 = jax.random.split(key)

    # Primary shape from the module spec (row-param path, HW % 128 == 0).
    _run_case(k1, N=2, C=4, H=16, W=16)
    # Small ragged-HW shape (ResNet-style 7x7) exercising the lane-param path.
    _run_case(k2, N=2, C=128, H=7, W=7)

    print("KERNEL_OK")
</pallas_src>

<mosaic_0001>
module attributes {stable_mosaic.version = 11 : i64} {
  func.func @_frozen_bn_kernel(%arg0: i32, %arg1: i32, %arg2: memref<8x256xf32, #tpu.memory_space<vmem>>, %arg3: memref<8x1xf32, #tpu.memory_space<vmem>>, %arg4: memref<8x1xf32, #tpu.memory_space<vmem>>, %arg5: memref<8x256xf32, #tpu.memory_space<vmem>>) attributes {dimension_semantics = [#tpu.dimension_semantics<parallel>, #tpu.dimension_semantics<parallel>], iteration_bounds = array<i64: 1, 1>, scalar_prefetch = 0 : i64, scratch_operands = 0 : i64, tpu.core_type = #tpu.core_type<tc>, window_params = [{transform_indices = @transform_0, window_bounds = array<i64: 8, 256>}, {transform_indices = @transform_1, window_bounds = array<i64: 8, 1>}, {transform_indices = @transform_2, window_bounds = array<i64: 8, 1>}, {transform_indices = @transform_3, window_bounds = array<i64: 8, 256>}]} {
    %c0 = arith.constant 0 : index
    %c0_0 = arith.constant 0 : index
    %0 = vector.load %arg2[%c0, %c0_0] : memref<8x256xf32, #tpu.memory_space<vmem>>, vector<8x256xf32>
    %c0_1 = arith.constant 0 : index
    %c0_2 = arith.constant 0 : index
    %1 = vector.load %arg3[%c0_1, %c0_2] : memref<8x1xf32, #tpu.memory_space<vmem>>, vector<8x1xf32>
    %2 = vector.broadcast %1 : vector<8x1xf32> to vector<8x256xf32>
    %3 = arith.mulf %0, %2 : vector<8x256xf32>
    %c0_3 = arith.constant 0 : index
    %c0_4 = arith.constant 0 : index
    %4 = vector.load %arg4[%c0_3, %c0_4] : memref<8x1xf32, #tpu.memory_space<vmem>>, vector<8x1xf32>
    %5 = vector.broadcast %4 : vector<8x1xf32> to vector<8x256xf32>
    %6 = arith.addf %3, %5 : vector<8x256xf32>
    %c0_5 = arith.constant 0 : index
    %c0_6 = arith.constant 0 : index
    %7 = vector.load %arg5[%c0_5, %c0_6] : memref<8x256xf32, #tpu.memory_space<vmem>>, vector<8x256xf32>
    tpu.vector_store %arg5[%c0_5, %c0_6], %6 {strides = array<i32>} : memref<8x256xf32, #tpu.memory_space<vmem>>, vector<8x256xf32>,
    return
  }
  func.func @transform_0(%arg0: i32, %arg1: i32) -> (i32, i32) {
    %c0_i32 = arith.constant 0 : i32
    return %arg0, %arg1 : i32, i32
  }
  func.func @transform_1(%arg0: i32, %arg1: i32) -> (i32, i32) {
    %c0_i32 = arith.constant 0 : i32
    %c0_i32_0 = arith.constant 0 : i32
    return %arg0, %c0_i32 : i32, i32
  }
  func.func @transform_2(%arg0: i32, %arg1: i32) -> (i32, i32) {
    %c0_i32 = arith.constant 0 : i32
    %c0_i32_0 = arith.constant 0 : i32
    return %arg0, %c0_i32 : i32, i32
  }
  func.func @transform_3(%arg0: i32, %arg1: i32) -> (i32, i32) {
    %c0_i32 = arith.constant 0 : i32
    return %arg0, %arg1 : i32, i32
  }
}

</mosaic_0001>

<bundles_post_ra>
// kernel: tpu_custom_call.1
= control target key start
LH: loop header
LB: loop body
LE: loop exit
PB: predicated region body
PF: predicated region fallthrough
CT: control target
= control target key end

     0   :  { %v74_v1 = vmov 0   ;;  %s111_s0 = inlined_call_operand.vmem [shape: f32[8,256], index: 0, kind: input, shape index: {}]   ;;  %s112_s1 = inlined_call_operand.vmem [shape: f32[8,1], index: 1, kind: input, shape index: {}]   ;;  %s113_s2 = inlined_call_operand.vmem [shape: f32[8,1], index: 2, kind: input, shape index: {}]   ;;  %s114_s3 = inlined_call_operand.hbm [shape: f32[8,256], index: 3, kind: output, shape index: {}]  }
   0x1   :  { %v17_v0 = vld [vmem:[%s112_s1] sm:$0xff]  ;;  %51 = vset.pattern.permute.xlu0 %v74_v1 }
   0x2   :  { %8 = vsyncpa [#allocation3], 0  ;;  %20 = vperm.xlu0 %51, %v17_v0   ;;  %v25_v2 = vld [vmem:[%s113_s2] sm:$0xff]  ;;  %v16_v5 = vld [vmem:[%s111_s0 + $0x8] sm:$0xff]  ;;  %s75_s20 = smov [#allocation2]  }
   0x3   :  { %v15_v4 = vld [vmem:[%s111_s0] sm:$0xff]  ;;  %s41_s1 = sshll.u32 %s75_s20, 4  ;;  %s42_s1 = int_to_ptr.vmem [resolvable:$true] %s41_s1 }
   0x4   :  { %s52_s2 = scalar_lea.vmem %s42_s1, 256  ;;  %p57_p1 = scmp.lt.s32.totalorder %s42_s1, %s42_s1 }
   0x5   :  { %p53_p0 = scmp.ne.s32.totalorder %s42_s1, %s52_s2  ;;  %p58_p2 = scmp.lt.s32.totalorder %s52_s2, %s52_s2 }
   0x6   :  { %28 = vperm.xlu0 %51, %v25_v2  }
   0x7   :  { %p59_p3 = por %p58_p2, %p57_p1 }
   0x9   :  { %p60_p4 = pnand %p59_p3, %p53_p0 }
  0x7d   :  { %v21_v3 = vpop.permute.xlu0 %20 }
  0x7e   :  { %v23_v6 = vmul.f32 %v21_v3, %v15_v4  ;;  %v24_v7 = vmul.f32 %v21_v3, %v16_v5 }
  0x81   :  { %v29_v8 = vpop.permute.xlu0 %28 }
  0x82   :  { %v31_v9 = vadd.f32 %v29_v8, %v23_v6  ;;  %v32_v10 = vadd.f32 %v29_v8, %v24_v7 }
  0x84   :  { %33 = vst [vmem:[#allocation2] sm:$0xff] %v31_v9  ;;  %34 = vst [vmem:[#allocation2 + $0x8] sm:$0xff] %v32_v10 }
  0x85   :  { %63 = shalt.err (!%p60_p4)
}
  0x86   :  { %44 = dma.vmem_to_hbm [thread:$0]  %s42_s1, 256, %s114_s3, [#allocation3]  }
  0x87   :  { %72 = dma.done.wait [#allocation3], 256  }
  0x88   :  { %73 = vsyncadd [#allocation3], 4294967040 }
  0x89   :  { %48 = vsyncpa [#allocation3], 1 }

</bundles_post_ra>
